<compile_context>
chip_gen: v5e
topology: v5e:2x2
jax: 0.10.0
libtpu: 0.0.40
codegen_flags: <defaults>
</compile_context>

<pallas_src>
import functools

import jax
import jax.numpy as jnp
from jax.experimental import pallas as pl
from jax.experimental.pallas import tpu as pltpu


# ---------------------------------------------------------------------------
# Fused Pallas kernel
# ---------------------------------------------------------------------------
def _encoder_kernel(n_hidden, *refs):
    """Fused Encoder forward for one batch tile.

    refs layout:
      [x_ref, eps_ref,
       w_0, b_0, ..., w_{n_hidden-1}, b_{n_hidden-1},
       w_muvar, b_muvar,           # fused (H_last, 2*Z) projection
       out_ref]                    # (TB, 3*Z) slab = [z | mu | log_var]
    """
    x_ref, eps_ref = refs[0], refs[1]
    hidden_refs = refs[2:2 + 2 * n_hidden]
    w_mv_ref = refs[2 + 2 * n_hidden]
    b_mv_ref = refs[3 + 2 * n_hidden]
    out_ref = refs[4 + 2 * n_hidden]

    # Hidden MLP: static (unrolled) python loop over layers; h stays on-chip.
    h = x_ref[...]
    for i in range(n_hidden):
        w = hidden_refs[2 * i][...]
        b = hidden_refs[2 * i + 1][...]          # (1, out) -> broadcasts over batch
        h = jnp.dot(h, w, preferred_element_type=jnp.float32) + b
        # ReLU on the VPU; cast back to the weight dtype so the next MXU push
        # runs at the model's compute precision (no-op for f32).
        h = jnp.maximum(h, 0.0).astype(w.dtype)

    # GaussianSample: one fused matmul producing [mu | log_var].
    y = jnp.dot(h, w_mv_ref[...], preferred_element_type=jnp.float32) + b_mv_ref[...]
    z_dim = y.shape[-1] // 2
    mu = y[:, :z_dim]
    lv = y[:, z_dim:]
    # Reparametrization trick: std = exp(0.5*logvar) (EUP), z = mu + std*eps (VPU).
    z = mu + jnp.exp(0.5 * lv) * eps_ref[...].astype(jnp.float32)

    # Single lane-dense writeback: (TB, 3*Z) slab [z | mu | log_var].
    out_ref[...] = jnp.concatenate([z, mu, lv], axis=-1).astype(out_ref.dtype)


# ---------------------------------------------------------------------------
# Batch-tile selection: weights resident + double-buffered activation tiles
# must fit in a conservative VMEM budget.
# ---------------------------------------------------------------------------
def _choose_batch_tile(B, x_dim, z_dim, weight_bytes, itemsize=4,
                       vmem_budget=40 << 20, max_tile=1024):
    # Per batch row in VMEM: x tile + eps tile + (z|mu|lv) out tile,
    # each double-buffered by the Pallas pipeline.
    per_row = (x_dim + z_dim + 3 * z_dim) * itemsize * 2
    avail = max(vmem_budget - weight_bytes, per_row * 8)
    tb = int(min(max_tile, max(8, avail // per_row)))
    tb = (tb // 8) * 8
    if B <= tb:
        return B            # full-batch block (full-extent dims are always legal)
    return max(8, tb)       # tiled: keep sublane-aligned (multiple of 8)


# ---------------------------------------------------------------------------
# Wrapper: one pallas_call for the whole encoder, batch grid, resident weights
# ---------------------------------------------------------------------------
def encoder_forward(params, x, eps):
    hidden = params["hidden"]
    w_mu, b_mu = params["mu"]
    w_lv, b_lv = params["log_var"]
    n_hidden = len(hidden)
    B, x_dim = x.shape
    z_dim = w_mu.shape[1]

    # Fuse the mu / log_var projections: one (H_last, 2*Z) weight + (1, 2*Z) bias.
    w_mv = jnp.concatenate([w_mu, w_lv], axis=1)
    b_mv = jnp.concatenate([b_mu, b_lv], axis=1)

    all_weights = [t for wb in hidden for t in wb] + [w_mv, b_mv]
    weight_bytes = sum(int(t.size) * t.dtype.itemsize for t in all_weights)

    # Batch tiling: one grid axis over batch; weights stay VMEM-resident
    # across grid steps (constant index_map -> no re-fetch).
    tb = _choose_batch_tile(B, x_dim, z_dim, weight_bytes)
    n_blk = -(-B // tb)
    b_pad = n_blk * tb
    if b_pad != B:
        x = jnp.pad(x, ((0, b_pad - B), (0, 0)))
        eps = jnp.pad(eps, ((0, b_pad - B), (0, 0)))

    def batch_spec(d):
        return pl.BlockSpec((tb, d), lambda i: (i, 0))

    def weight_spec(shape):
        return pl.BlockSpec(shape, lambda i: (0, 0))

    in_specs = [batch_spec(x_dim), batch_spec(z_dim)]
    operands = [x, eps]
    for w, b in hidden:
        in_specs += [weight_spec(w.shape), weight_spec(b.shape)]
        operands += [w, b]
    in_specs += [weight_spec(w_mv.shape), weight_spec(b_mv.shape)]
    operands += [w_mv, b_mv]

    out = pl.pallas_call(
        functools.partial(_encoder_kernel, n_hidden),
        out_shape=jax.ShapeDtypeStruct((b_pad, 3 * z_dim), jnp.float32),
        grid=(n_blk,),
        in_specs=in_specs,
        out_specs=pl.BlockSpec((tb, 3 * z_dim), lambda i: (i, 0)),
        compiler_params=pltpu.CompilerParams(
            dimension_semantics=("parallel",),
            vmem_limit_bytes=64 << 20),
    )(*operands)

    out = out[:B]
    z = out[:, :z_dim]
    mu = out[:, z_dim:2 * z_dim]
    log_var = out[:, 2 * z_dim:]
    return z, mu, log_var


encoder_forward_jit = jax.jit(encoder_forward)


# ---------------------------------------------------------------------------
# Parameter init (matches the PyTorch nn.Linear layout: y = x @ W + b)
# ---------------------------------------------------------------------------
def init_encoder_params(key, dims):
    """dims = [x_dim, [h_dims...], z_dim]; matches the PyTorch module layout."""
    x_dim, h_dims, z_dim = dims
    layer_sizes = [x_dim] + h_dims
    params = {"hidden": []}
    for i in range(1, len(layer_sizes)):
        key, kw, kb = jax.random.split(key, 3)
        fan_in, fan_out = layer_sizes[i - 1], layer_sizes[i]
        bound = 1.0 / jnp.sqrt(fan_in)
        w = jax.random.uniform(kw, (fan_in, fan_out), jnp.float32, -bound, bound)
        b = jax.random.uniform(kb, (1, fan_out), jnp.float32, -bound, bound)
        params["hidden"].append((w, b))
    fan_in = layer_sizes[-1]
    bound = 1.0 / jnp.sqrt(fan_in)
    key, k1, k2, k3, k4 = jax.random.split(key, 5)
    params["mu"] = (
        jax.random.uniform(k1, (fan_in, z_dim), jnp.float32, -bound, bound),
        jax.random.uniform(k2, (1, z_dim), jnp.float32, -bound, bound),
    )
    params["log_var"] = (
        jax.random.uniform(k3, (fan_in, z_dim), jnp.float32, -bound, bound),
        jax.random.uniform(k4, (1, z_dim), jnp.float32, -bound, bound),
    )
    return params


# ---------------------------------------------------------------------------
# Pure-JAX reference for correctness checking
# ---------------------------------------------------------------------------
def encoder_ref(params, x, eps):
    h = x
    for w, b in params["hidden"]:
        h = jnp.maximum(h @ w + b, 0.0)
    w_mu, b_mu = params["mu"]
    w_lv, b_lv = params["log_var"]
    mu = h @ w_mu + b_mu
    lv = h @ w_lv + b_lv
    z = mu + jnp.exp(0.5 * lv) * eps
    return z, mu, lv


if __name__ == "__main__":
    # dims = [x_dim, [hidden_dims], z_dim]
    dims = [32, [64, 48], 16]
    batch = 8

    key = jax.random.PRNGKey(0)
    key, k_params, k_x, k_eps = jax.random.split(key, 4)

    params = init_encoder_params(k_params, dims)
    x = jax.random.normal(k_x, (batch, dims[0]), jnp.float32)
    # epsilon for the reparametrization trick (torch.randn in the reference).
    # TODO(synk): could be generated in-kernel via pltpu.prng_* once exact
    # reproducibility vs. an externally supplied eps is no longer required.
    eps = jax.random.normal(k_eps, (batch, dims[2]), jnp.float32)

    z, mu, log_var = encoder_forward_jit(params, x, eps)
    jax.block_until_ready((z, mu, log_var))

    z_ref, mu_ref, lv_ref = encoder_ref(params, x, eps)
    assert jnp.allclose(z, z_ref, atol=1e-5, rtol=1e-5)
    assert jnp.allclose(mu, mu_ref, atol=1e-5, rtol=1e-5)
    assert jnp.allclose(log_var, lv_ref, atol=1e-5, rtol=1e-5)

    print("KERNEL_OK")
</pallas_src>

<mosaic_0001>
module attributes {stable_mosaic.version = 11 : i64} {
  func.func @_encoder_kernel(%arg0: i32, %arg1: memref<8x32xf32, #tpu.memory_space<vmem>>, %arg2: memref<8x16xf32, #tpu.memory_space<vmem>>, %arg3: memref<32x64xf32, #tpu.memory_space<vmem>>, %arg4: memref<1x64xf32, #tpu.memory_space<vmem>>, %arg5: memref<64x48xf32, #tpu.memory_space<vmem>>, %arg6: memref<1x48xf32, #tpu.memory_space<vmem>>, %arg7: memref<48x32xf32, #tpu.memory_space<vmem>>, %arg8: memref<1x32xf32, #tpu.memory_space<vmem>>, %arg9: memref<8x48xf32, #tpu.memory_space<vmem>>) attributes {dimension_semantics = [#tpu.dimension_semantics<parallel>], iteration_bounds = array<i64: 1>, scalar_prefetch = 0 : i64, scratch_operands = 0 : i64, tpu.core_type = #tpu.core_type<tc>, window_params = [{transform_indices = @transform_0, window_bounds = array<i64: 8, 32>}, {transform_indices = @transform_1, window_bounds = array<i64: 8, 16>}, {pipeline_mode = #tpu.pipeline_mode<synchronous>, transform_indices = @transform_2, window_bounds = array<i64: 32, 64>}, {pipeline_mode = #tpu.pipeline_mode<synchronous>, transform_indices = @transform_3, window_bounds = array<i64: 1, 64>}, {pipeline_mode = #tpu.pipeline_mode<synchronous>, transform_indices = @transform_4, window_bounds = array<i64: 64, 48>}, {pipeline_mode = #tpu.pipeline_mode<synchronous>, transform_indices = @transform_5, window_bounds = array<i64: 1, 48>}, {pipeline_mode = #tpu.pipeline_mode<synchronous>, transform_indices = @transform_6, window_bounds = array<i64: 48, 32>}, {pipeline_mode = #tpu.pipeline_mode<synchronous>, transform_indices = @transform_7, window_bounds = array<i64: 1, 32>}, {transform_indices = @transform_8, window_bounds = array<i64: 8, 48>}]} {
    %c0 = arith.constant 0 : index
    %c0_0 = arith.constant 0 : index
    %0 = vector.load %arg1[%c0, %c0_0] : memref<8x32xf32, #tpu.memory_space<vmem>>, vector<8x32xf32>
    %c0_1 = arith.constant 0 : index
    %c0_2 = arith.constant 0 : index
    %1 = vector.load %arg3[%c0_1, %c0_2] : memref<32x64xf32, #tpu.memory_space<vmem>>, vector<32x64xf32>
    %c0_3 = arith.constant 0 : index
    %c0_4 = arith.constant 0 : index
    %2 = vector.load %arg4[%c0_3, %c0_4] : memref<1x64xf32, #tpu.memory_space<vmem>>, vector<1x64xf32>
    %cst = arith.constant dense<0.000000e+00> : vector<8x64xf32>
    %3 = tpu.matmul %0, %1, %cst {dimension_numbers = #tpu.dot_dimension_numbers<[1], [0], [0], [1], [0, 0, 1, 1], [], []>} : vector<8x32xf32>, vector<32x64xf32>, vector<8x64xf32> -> vector<8x64xf32>
    %4 = vector.broadcast %2 : vector<1x64xf32> to vector<8x64xf32>
    %5 = arith.addf %3, %4 : vector<8x64xf32>
    %cst_5 = arith.constant 0.000000e+00 : f32
    %6 = vector.broadcast %cst_5 : f32 to vector<8x64xf32>
    %7 = arith.maximumf %5, %6 : vector<8x64xf32>
    %c0_6 = arith.constant 0 : index
    %c0_7 = arith.constant 0 : index
    %8 = vector.load %arg5[%c0_6, %c0_7] : memref<64x48xf32, #tpu.memory_space<vmem>>, vector<64x48xf32>
    %c0_8 = arith.constant 0 : index
    %c0_9 = arith.constant 0 : index
    %9 = vector.load %arg6[%c0_8, %c0_9] : memref<1x48xf32, #tpu.memory_space<vmem>>, vector<1x48xf32>
    %cst_10 = arith.constant dense<0.000000e+00> : vector<8x48xf32>
    %10 = tpu.matmul %7, %8, %cst_10 {dimension_numbers = #tpu.dot_dimension_numbers<[1], [0], [0], [1], [0, 0, 1, 1], [], []>} : vector<8x64xf32>, vector<64x48xf32>, vector<8x48xf32> -> vector<8x48xf32>
    %11 = vector.broadcast %9 : vector<1x48xf32> to vector<8x48xf32>
    %12 = arith.addf %10, %11 : vector<8x48xf32>
    %cst_11 = arith.constant 0.000000e+00 : f32
    %13 = vector.broadcast %cst_11 : f32 to vector<8x48xf32>
    %14 = arith.maximumf %12, %13 : vector<8x48xf32>
    %c0_12 = arith.constant 0 : index
    %c0_13 = arith.constant 0 : index
    %15 = vector.load %arg7[%c0_12, %c0_13] : memref<48x32xf32, #tpu.memory_space<vmem>>, vector<48x32xf32>
    %cst_14 = arith.constant dense<0.000000e+00> : vector<8x32xf32>
    %16 = tpu.matmul %14, %15, %cst_14 {dimension_numbers = #tpu.dot_dimension_numbers<[1], [0], [0], [1], [0, 0, 1, 1], [], []>} : vector<8x48xf32>, vector<48x32xf32>, vector<8x32xf32> -> vector<8x32xf32>
    %c0_15 = arith.constant 0 : index
    %c0_16 = arith.constant 0 : index
    %17 = vector.load %arg8[%c0_15, %c0_16] : memref<1x32xf32, #tpu.memory_space<vmem>>, vector<1x32xf32>
    %18 = vector.broadcast %17 : vector<1x32xf32> to vector<8x32xf32>
    %19 = arith.addf %16, %18 : vector<8x32xf32>
    %20 = vector.extract_strided_slice %19 {offsets = [0, 0], sizes = [8, 16], strides = [1, 1]} : vector<8x32xf32> to vector<8x16xf32>
    %21 = vector.extract_strided_slice %19 {offsets = [0, 16], sizes = [8, 16], strides = [1, 1]} : vector<8x32xf32> to vector<8x16xf32>
    %cst_17 = arith.constant 5.000000e-01 : f32
    %22 = vector.broadcast %cst_17 : f32 to vector<8x16xf32>
    %23 = arith.mulf %22, %21 : vector<8x16xf32>
    %24 = math.exp %23 : vector<8x16xf32>
    %c0_18 = arith.constant 0 : index
    %c0_19 = arith.constant 0 : index
    %25 = vector.load %arg2[%c0_18, %c0_19] : memref<8x16xf32, #tpu.memory_space<vmem>>, vector<8x16xf32>
    %26 = arith.mulf %24, %25 : vector<8x16xf32>
    %27 = arith.addf %20, %26 : vector<8x16xf32>
    %28 = tpu.concatenate %27, %20, %21 in 1 : vector<8x16xf32>, vector<8x16xf32>, vector<8x16xf32> -> vector<8x48xf32>
    %c0_20 = arith.constant 0 : index
    %c0_21 = arith.constant 0 : index
    %29 = vector.load %arg9[%c0_20, %c0_21] : memref<8x48xf32, #tpu.memory_space<vmem>>, vector<8x48xf32>
    tpu.vector_store %arg9[%c0_20, %c0_21], %28 {strides = array<i32>} : memref<8x48xf32, #tpu.memory_space<vmem>>, vector<8x48xf32>,
    return
  }
  func.func @transform_0(%arg0: i32) -> (i32, i32) {
    %c0_i32 = arith.constant 0 : i32
    %c0_i32_0 = arith.constant 0 : i32
    return %arg0, %c0_i32 : i32, i32
  }
  func.func @transform_1(%arg0: i32) -> (i32, i32) {
    %c0_i32 = arith.constant 0 : i32
    %c0_i32_0 = arith.constant 0 : i32
    return %arg0, %c0_i32 : i32, i32
  }
  func.func @transform_2(%arg0: i32) -> (i32, i32) {
    %c0_i32 = arith.constant 0 : i32
    %c0_i32_0 = arith.constant 0 : i32
    %c0_i32_1 = arith.constant 0 : i32
    return %c0_i32, %c0_i32_0 : i32, i32
  }
  func.func @transform_3(%arg0: i32) -> (i32, i32) {
    %c0_i32 = arith.constant 0 : i32
    %c0_i32_0 = arith.constant 0 : i32
    %c0_i32_1 = arith.constant 0 : i32
    return %c0_i32, %c0_i32_0 : i32, i32
  }
  func.func @transform_4(%arg0: i32) -> (i32, i32) {
    %c0_i32 = arith.constant 0 : i32
    %c0_i32_0 = arith.constant 0 : i32
    %c0_i32_1 = arith.constant 0 : i32
    return %c0_i32, %c0_i32_0 : i32, i32
  }
  func.func @transform_5(%arg0: i32) -> (i32, i32) {
    %c0_i32 = arith.constant 0 : i32
    %c0_i32_0 = arith.constant 0 : i32
    %c0_i32_1 = arith.constant 0 : i32
    return %c0_i32, %c0_i32_0 : i32, i32
  }
  func.func @transform_6(%arg0: i32) -> (i32, i32) {
    %c0_i32 = arith.constant 0 : i32
    %c0_i32_0 = arith.constant 0 : i32
    %c0_i32_1 = arith.constant 0 : i32
    return %c0_i32, %c0_i32_0 : i32, i32
  }
  func.func @transform_7(%arg0: i32) -> (i32, i32) {
    %c0_i32 = arith.constant 0 : i32
    %c0_i32_0 = arith.constant 0 : i32
    %c0_i32_1 = arith.constant 0 : i32
    return %c0_i32, %c0_i32_0 : i32, i32
  }
  func.func @transform_8(%arg0: i32) -> (i32, i32) {
    %c0_i32 = arith.constant 0 : i32
    %c0_i32_0 = arith.constant 0 : i32
    return %arg0, %c0_i32 : i32, i32
  }
}

</mosaic_0001>

<bundles_post_ra>
// kernel: encoder_forward.1
= control target key start
LH: loop header
LB: loop body
LE: loop exit
PB: predicated region body
PF: predicated region fallthrough
CT: control target
= control target key end

     0   :  { %vm38_vm0 = vcmask 261120   ;;  %vm75_vm1 = vcmask 523264   ;;  %s170_s21 = smov 16   ;;  %vm110_vm2 = vcmask 392192   ;;  %vm152_vm3 = vcmask 130048   ;;  %s293_s2 = inlined_call_operand.vmem [shape: f32[32,64], index: 2, kind: input, shape index: {}]   ;;  %s294_s4 = inlined_call_operand.vmem [shape: f32[64,48], index: 4, kind: input, shape index: {}]   ;;  %s295_s0 = inlined_call_operand.vmem [shape: f32[8,32], index: 0, kind: input, shape index: {}]   ;;  %s296_s3 = inlined_call_operand.vmem [shape: f32[1,64], index: 3, kind: input, shape index: {}]   ;;  %s297_s5 = inlined_call_operand.vmem [shape: f32[1,48], index: 5, kind: input, shape index: {}]   ;;  %s298_s6 = inlined_call_operand.vmem [shape: f32[48,32], index: 6, kind: input, shape index: {}]   ;;  %s299_s7 = inlined_call_operand.vmem [shape: f32[1,32], index: 7, kind: input, shape index: {}]   ;;  %s300_s1 = inlined_call_operand.vmem [shape: f32[8,16], index: 1, kind: input, shape index: {}]   ;;  %s301_s8 = inlined_call_operand.vmem [shape: f32[8,48], index: 8, kind: output, shape index: {}]  }
   0x1   :  { %v33_v0 = vld [vmem:[%s293_s2 + $0x18] sm:$0xff]  ;;  %v32_v1 = vld [vmem:[%s293_s2 + $0x10] sm:$0xff]  ;;  %v31_v3 = vld [vmem:[%s293_s2 + $0x8] sm:$0xff] }
   0x2   :  { %54 = vmatpush.msra.mxu0 %v33_v0  ;;  %v70_v2 = vld [vmem:[%s294_s4 + $0x38] sm:$0xff]  ;;  %v69_v4 = vld [vmem:[%s294_s4 + $0x30] sm:$0xff]  ;;  %v68_v5 = vld [vmem:[%s294_s4 + $0x28] sm:$0xff] }
   0x3   :  { %87 = vmatpush.msra.mxu1 %v70_v2  ;;  %v30_v6 = vld [vmem:[%s293_s2] sm:$0xff]  ;;  %v66_v9 = vld [vmem:[%s294_s4 + $0x18] sm:$0xff]  ;;  %v65_v10 = vld [vmem:[%s294_s4 + $0x10] sm:$0xff] }
   0x4   :  { %55 = vmatpush.msra.mxu0 %v32_v1  ;;  %v29_v7 = vld [vmem:[%s295_s0] sm:$0xff]  ;;  %v64_v11 = vld [vmem:[%s294_s4 + $0x8] sm:$0xff]  ;;  %v103_v15 = vld [vmem:[%s298_s6 + $0x18] sm:$0xff] }
   0x5   :  { %88 = vmatpush.msra.mxu1 %v69_v4  ;;  %v67_v8 = vld [vmem:[%s294_s4 + $0x20] sm:$0xff]  ;;  %v105_v13 = vld [vmem:[%s298_s6 + $0x28] sm:$0xff]  ;;  %v102_v20 = vld [vmem:[%s298_s6 + $0x10] sm:$0xff] }
   0x6   :  { %56 = vmatpush.msra.mxu0 %v31_v3  ;;  %v63_v12 = vld [vmem:[%s294_s4] sm:$0xff]  ;;  %124 = vmatpush.msra.mxu2 %v105_v13  ;;  %v101_v21 = vld [vmem:[%s298_s6 + $0x8] sm:$0xff] }
   0x7   :  { %89 = vmatpush.msra.mxu1 %v68_v5  ;;  %v104_v14 = vld [vmem:[%s298_s6 + $0x20] sm:$0xff] }
   0x8   :  { %57 = vmatpush.msra.mxu0 %v30_v6  ;;  %125 = vmatpush.msra.mxu2 %v104_v14  ;;  %v165_v16 = vld [vmem:[%s296_s3] ss:$0 sm:$0xff] }
   0x9   :  { %160 = vmatmul.msk.f32.vlgmr.msra.gmra.mxu0 %vm38_vm0, %v29_v7  ;;  %90 = vmatpush.msra.mxu1 %v67_v8  ;;  %v100_v22 = vld [vmem:[%s298_s6] sm:$0xff] }
   0xa   :  { %126 = vmatpush.msra.mxu2 %v103_v15  ;;  %v137_v23 = vld [vmem:[%s300_s1] sm:$0xff]  ;;  %s171_s1 = smov 112  }
   0xb   :  { %91 = vmatpush.msra.mxu1 %v66_v9  ;;  %139 = vrot.lane.b32.xlu0 %v137_v23, %s170_s21  ;;  %v166_v24 = vld [vmem:[%s297_s5] ss:$0 sm:$0xff] }
   0xc   :  { %127 = vmatpush.msra.mxu2 %v102_v20  ;;  %v167_v28 = vld [vmem:[%s299_s7] ss:$0 sm:$0xff] }
   0xd   :  { %92 = vmatpush.msra.mxu1 %v65_v10 }
   0xe   :  { %128 = vmatpush.msra.mxu2 %v101_v21 }
   0xf   :  { %93 = vmatpush.msra.mxu1 %v64_v11 }
  0x10   :  { %129 = vmatpush.msra.mxu2 %v100_v22 }
  0x11   :  { %94 = vmatpush.msra.mxu1 %v63_v12 }
  0x7d   :  { %v140_v33 = vpop.permute.xlu0 %139 }
  0x86   :  { %v59_v17 = vpop.f32.mrf.mxu0 }
  0x87   :  { %v60_v18 = vadd.f32 %v165_v16, %v59_v17 }
  0x89   :  { %v62_v19 = vmax.f32 %v60_v18, 0.0 }
  0x8b   :  { %161 = vmatmul.msk.f32.vlgmr.msra.gmra.mxu1 %vm75_vm1, %v62_v19 }
 0x108   :  { %v96_v25 = vpop.f32.mrf.mxu1 }
 0x109   :  { %v97_v26 = vadd.f32 %v166_v24, %v96_v25 }
 0x10b   :  { %v99_v27 = vmax.f32 %v97_v26, 0.0 }
 0x10d   :  { %162 = vmatmul.msk.f32.vlgmr.msra.gmra.mxu2 %vm110_vm2, %v99_v27 }
 0x190   :  { %v131_v29 = vpop.f32.mrf.mxu2 }
 0x191   :  { %v132_v30 = vadd.f32 %v167_v28, %v131_v29 }
 0x193   :  { %v134_v31 = vmul.f32 0.5, %v132_v30  ;;  %149 = vrot.lane.b32.xlu1 %v132_v30, %s170_s21 }
 0x195   :  { %v135_v32 = vmul.f32 1.442695, %v134_v31 }
 0x197   :  { %168 = vpow2.f32 %v135_v32 }
 0x19d   :  { %v169_v34 = vpop.eup %168 }
 0x19e   :  { %v142_v35 = vmul.f32 %v169_v34, %v140_v33 }
 0x1a0   :  { %144 = vrot.lane.b32.xlu0 %v142_v35, %s171_s1 }
 0x205   :  { %v150_v38 = vpop.permute.xlu1 %149 }
 0x212   :  { %v145_v36 = vpop.permute.xlu0 %144 }
 0x213   :  { %v147_v37 = vadd.f32 %v145_v36, %v132_v30 }
 0x215   :  { %v153_v39 = vsel %vm152_vm3, %v147_v37, %v150_v38 }
 0x216   :  { %v154_v40 = vsel %vm38_vm0, %v153_v39, %v150_v38 }
 0x217   :  { %155 = vst.msk [vmem:[%s301_s8] sm:$0xff] %vm110_vm2, %v154_v40 }

</bundles_post_ra>
